<compile_context>
chip_gen: v7x
topology: tpu7x:2x2x1
jax: 0.10.0
libtpu: 0.0.40
codegen_flags: <defaults>
</compile_context>

<pallas_src>
import functools

import jax
import jax.numpy as jnp
from jax.experimental import pallas as pl
from jax.experimental.pallas import tpu as pltpu


def _round_up(n, m):
    return ((n + m - 1) // m) * m


def _mlp_kernel(xT_ref, w1T_ref, b1_ref, w2T_ref, b2_ref, w3T_ref, b3_ref, oT_ref):
    # Transposed layout: batch on lanes. All layers fused; weights resident.
    xT = xT_ref[...]                                                      # (in, TILE_B)
    h1 = jnp.dot(w1T_ref[...], xT, preferred_element_type=jnp.float32) + b1_ref[...]
    h1 = jnp.maximum(h1, 0.0)                                             # (32, TILE_B)
    h2 = jnp.dot(w2T_ref[...], h1, preferred_element_type=jnp.float32) + b2_ref[...]
    h2 = jnp.maximum(h2, 0.0)                                             # (16, TILE_B)
    out = jnp.dot(w3T_ref[...], h2, preferred_element_type=jnp.float32) + b3_ref[...]
    oT_ref[...] = out.astype(oT_ref.dtype)                                # (out, TILE_B)


@functools.partial(jax.jit, static_argnames=("tile_b",))
def _net_forward_2d(x, params, tile_b=None):
    """x: (B, input_nums) float32. params: w{1,2,3}: (in,out), b{1,2,3}: (1,out)."""
    x = x.astype(jnp.float32)
    B, in_nums = x.shape
    out_nums = params["w3"].shape[1]
    h1_n = params["w1"].shape[1]
    h2_n = params["w2"].shape[1]

    # Lane-aligned batch tile.  Scale with the batch so small batches take a
    # single grid step and huge replay batches take few steps (per-step grid
    # overhead dominates DMA for this tiny MLP).  Working set per step:
    # (in+out)*4B*2 bufs + (h1+h2)*4B of intermediates per column (~264 B/col),
    # so even TILE_B=8192 stays ~2 MiB — safe within v7x's 64 MiB VMEM.
    if tile_b is None:
        tile_b = min(8192, _round_up(max(B, 1), 128))
    else:
        tile_b = _round_up(max(tile_b, 128), 128)
    Bp = _round_up(max(B, 1), tile_b)
    n_blocks = Bp // tile_b

    # Batch on the lane axis: zero-pad the batch and transpose.  Padding rows
    # flow through the MLP harmlessly and are sliced off at the end.
    xT = jnp.pad(x, ((0, Bp - B), (0, 0))).T                             # (in, Bp)

    # Transposed weights (out, in) and column biases (out, 1) so each layer is
    # h^T = W^T @ x^T + b with the batch dense along lanes.
    w1T = params["w1"].T
    w2T = params["w2"].T
    w3T = params["w3"].T
    b1 = params["b1"].reshape(h1_n, 1)
    b2 = params["b2"].reshape(h2_n, 1)
    b3 = params["b3"].reshape(out_nums, 1)

    # Constant-index full blocks: weights DMA'd once, resident across the grid.
    full = lambda a: pl.BlockSpec(a.shape, lambda i: (0,) * a.ndim)

    flops = 2 * B * (in_nums * h1_n + h1_n * h2_n + h2_n * out_nums)
    bytes_accessed = 4 * (
        B * (in_nums + out_nums)
        + in_nums * h1_n + h1_n * h2_n + h2_n * out_nums
        + h1_n + h2_n + out_nums
    )

    oT = pl.pallas_call(
        _mlp_kernel,
        out_shape=jax.ShapeDtypeStruct((out_nums, Bp), jnp.float32),
        grid=(n_blocks,),
        in_specs=[
            pl.BlockSpec((in_nums, tile_b), lambda i: (0, i)),   # x^T tile
            full(w1T), full(b1),
            full(w2T), full(b2),
            full(w3T), full(b3),
        ],
        out_specs=pl.BlockSpec((out_nums, tile_b), lambda i: (0, i)),
        compiler_params=pltpu.CompilerParams(
            dimension_semantics=("parallel",),
        ),
        cost_estimate=pl.CostEstimate(
            flops=flops, transcendentals=0, bytes_accessed=bytes_accessed
        ),
    )(xT, w1T, b1, w2T, b2, w3T, b3)

    # Back to the PyTorch (B, out_nums) layout in the XLA wrapper (tiny output).
    return oT[:, :B].T


def net_forward(x, params, tile_b=None):
    """Forward pass matching Net.forward: accepts (B, in) or a single (in,) state."""
    x = jnp.asarray(x, jnp.float32)
    if x.ndim == 1:
        return _net_forward_2d(x[None, :], params, tile_b=tile_b)[0]
    return _net_forward_2d(x, params, tile_b=tile_b)


def init_params(key, input_nums=4, output_nums=2):
    """Deterministic init mirroring the module: xavier_normal_ on Linear weights,
    PyTorch-default uniform(-1/sqrt(fan_in), 1/sqrt(fan_in)) for biases."""
    dims = [(input_nums, 32), (32, 16), (16, output_nums)]
    params = {}
    keys = jax.random.split(key, 2 * len(dims))
    for i, (fan_in, fan_out) in enumerate(dims):
        std = (2.0 / (fan_in + fan_out)) ** 0.5  # xavier normal, gain=1
        w = std * jax.random.normal(keys[2 * i], (fan_in, fan_out), jnp.float32)
        bound = 1.0 / (fan_in ** 0.5)
        b = jax.random.uniform(keys[2 * i + 1], (1, fan_out), jnp.float32,
                               minval=-bound, maxval=bound)
        params[f"w{i + 1}"] = w
        params[f"b{i + 1}"] = b
    return params


def _reference(x, params):
    h1 = jnp.maximum(x @ params["w1"] + params["b1"], 0.0)
    h2 = jnp.maximum(h1 @ params["w2"] + params["b2"], 0.0)
    return h2 @ params["w3"] + params["b3"]


if __name__ == "__main__":
    key = jax.random.PRNGKey(0)
    pkey, xkey, xkey2 = jax.random.split(key, 3)

    input_nums, output_nums, batch = 4, 2, 8
    params = init_params(pkey, input_nums, output_nums)

    # Small DQN-style batch.
    x = jax.random.normal(xkey, (batch, input_nums), jnp.float32)
    out = jax.block_until_ready(net_forward(x, params))
    ref = _reference(x, params)
    assert out.shape == (batch, output_nums)
    assert jnp.allclose(out, ref, atol=1e-5), "mismatch vs reference (small batch)"

    # Larger, non-aligned batch to exercise padding + multi-step batch grid.
    x2 = jax.random.normal(xkey2, (300, input_nums), jnp.float32)
    out2 = jax.block_until_ready(net_forward(x2, params, tile_b=128))
    ref2 = _reference(x2, params)
    assert out2.shape == (300, output_nums)
    assert jnp.allclose(out2, ref2, atol=1e-5), "mismatch vs reference (grid batch)"

    # Single-state (1-D) input, as used when acting greedily in DQN.
    x3 = x[0]
    out3 = jax.block_until_ready(net_forward(x3, params))
    assert out3.shape == (output_nums,)
    assert jnp.allclose(out3, _reference(x3[None, :], params)[0], atol=1e-5)

    print("KERNEL_OK")
</pallas_src>

<mosaic_0001>
module attributes {stable_mosaic.version = 11 : i64} {
  func.func @_mlp_kernel(%arg0: i32, %arg1: memref<4x128xf32, #tpu.memory_space<vmem>>, %arg2: memref<32x4xf32, #tpu.memory_space<vmem>>, %arg3: memref<32x1xf32, #tpu.memory_space<vmem>>, %arg4: memref<16x32xf32, #tpu.memory_space<vmem>>, %arg5: memref<16x1xf32, #tpu.memory_space<vmem>>, %arg6: memref<2x16xf32, #tpu.memory_space<vmem>>, %arg7: memref<2x1xf32, #tpu.memory_space<vmem>>, %arg8: memref<2x128xf32, #tpu.memory_space<vmem>>) attributes {dimension_semantics = [#tpu.dimension_semantics<parallel>], iteration_bounds = array<i64: 1>, scalar_prefetch = 0 : i64, scratch_operands = 0 : i64, tpu.core_type = #tpu.core_type<tc>, window_params = [{transform_indices = @transform_0, window_bounds = array<i64: 4, 128>}, {pipeline_mode = #tpu.pipeline_mode<synchronous>, transform_indices = @transform_1, window_bounds = array<i64: 32, 4>}, {pipeline_mode = #tpu.pipeline_mode<synchronous>, transform_indices = @transform_2, window_bounds = array<i64: 32, 1>}, {pipeline_mode = #tpu.pipeline_mode<synchronous>, transform_indices = @transform_3, window_bounds = array<i64: 16, 32>}, {pipeline_mode = #tpu.pipeline_mode<synchronous>, transform_indices = @transform_4, window_bounds = array<i64: 16, 1>}, {pipeline_mode = #tpu.pipeline_mode<synchronous>, transform_indices = @transform_5, window_bounds = array<i64: 2, 16>}, {pipeline_mode = #tpu.pipeline_mode<synchronous>, transform_indices = @transform_6, window_bounds = array<i64: 2, 1>}, {transform_indices = @transform_7, window_bounds = array<i64: 2, 128>}]} {
    %c0 = arith.constant 0 : index
    %c0_0 = arith.constant 0 : index
    %0 = vector.load %arg1[%c0, %c0_0] : memref<4x128xf32, #tpu.memory_space<vmem>>, vector<4x128xf32>
    %c0_1 = arith.constant 0 : index
    %c0_2 = arith.constant 0 : index
    %1 = vector.load %arg2[%c0_1, %c0_2] : memref<32x4xf32, #tpu.memory_space<vmem>>, vector<32x4xf32>
    %cst = arith.constant dense<0.000000e+00> : vector<32x128xf32>
    %2 = tpu.matmul %1, %0, %cst {dimension_numbers = #tpu.dot_dimension_numbers<[1], [0], [0], [1], [0, 0, 1, 1], [], []>} : vector<32x4xf32>, vector<4x128xf32>, vector<32x128xf32> -> vector<32x128xf32>
    %c0_3 = arith.constant 0 : index
    %c0_4 = arith.constant 0 : index
    %3 = vector.load %arg3[%c0_3, %c0_4] : memref<32x1xf32, #tpu.memory_space<vmem>>, vector<32x1xf32>
    %4 = vector.broadcast %3 : vector<32x1xf32> to vector<32x128xf32>
    %5 = arith.addf %2, %4 : vector<32x128xf32>
    %cst_5 = arith.constant 0.000000e+00 : f32
    %6 = vector.broadcast %cst_5 : f32 to vector<32x128xf32>
    %7 = arith.maximumf %5, %6 : vector<32x128xf32>
    %c0_6 = arith.constant 0 : index
    %c0_7 = arith.constant 0 : index
    %8 = vector.load %arg4[%c0_6, %c0_7] : memref<16x32xf32, #tpu.memory_space<vmem>>, vector<16x32xf32>
    %cst_8 = arith.constant dense<0.000000e+00> : vector<16x128xf32>
    %9 = tpu.matmul %8, %7, %cst_8 {dimension_numbers = #tpu.dot_dimension_numbers<[1], [0], [0], [1], [0, 0, 1, 1], [], []>} : vector<16x32xf32>, vector<32x128xf32>, vector<16x128xf32> -> vector<16x128xf32>
    %c0_9 = arith.constant 0 : index
    %c0_10 = arith.constant 0 : index
    %10 = vector.load %arg5[%c0_9, %c0_10] : memref<16x1xf32, #tpu.memory_space<vmem>>, vector<16x1xf32>
    %11 = vector.broadcast %10 : vector<16x1xf32> to vector<16x128xf32>
    %12 = arith.addf %9, %11 : vector<16x128xf32>
    %cst_11 = arith.constant 0.000000e+00 : f32
    %13 = vector.broadcast %cst_11 : f32 to vector<16x128xf32>
    %14 = arith.maximumf %12, %13 : vector<16x128xf32>
    %c0_12 = arith.constant 0 : index
    %c0_13 = arith.constant 0 : index
    %15 = vector.load %arg6[%c0_12, %c0_13] : memref<2x16xf32, #tpu.memory_space<vmem>>, vector<2x16xf32>
    %cst_14 = arith.constant dense<0.000000e+00> : vector<2x128xf32>
    %16 = tpu.matmul %15, %14, %cst_14 {dimension_numbers = #tpu.dot_dimension_numbers<[1], [0], [0], [1], [0, 0, 1, 1], [], []>} : vector<2x16xf32>, vector<16x128xf32>, vector<2x128xf32> -> vector<2x128xf32>
    %c0_15 = arith.constant 0 : index
    %c0_16 = arith.constant 0 : index
    %17 = vector.load %arg7[%c0_15, %c0_16] : memref<2x1xf32, #tpu.memory_space<vmem>>, vector<2x1xf32>
    %18 = vector.broadcast %17 : vector<2x1xf32> to vector<2x128xf32>
    %19 = arith.addf %16, %18 : vector<2x128xf32>
    %c0_17 = arith.constant 0 : index
    %c0_18 = arith.constant 0 : index
    %20 = vector.load %arg8[%c0_17, %c0_18] : memref<2x128xf32, #tpu.memory_space<vmem>>, vector<2x128xf32>
    tpu.vector_store %arg8[%c0_17, %c0_18], %19 {strides = array<i32>} : memref<2x128xf32, #tpu.memory_space<vmem>>, vector<2x128xf32>,
    return
  }
  func.func @transform_0(%arg0: i32) -> (i32, i32) {
    %c0_i32 = arith.constant 0 : i32
    %c0_i32_0 = arith.constant 0 : i32
    return %c0_i32, %arg0 : i32, i32
  }
  func.func @transform_1(%arg0: i32) -> (i32, i32) {
    %c0_i32 = arith.constant 0 : i32
    %c0_i32_0 = arith.constant 0 : i32
    %c0_i32_1 = arith.constant 0 : i32
    return %c0_i32, %c0_i32_0 : i32, i32
  }
  func.func @transform_2(%arg0: i32) -> (i32, i32) {
    %c0_i32 = arith.constant 0 : i32
    %c0_i32_0 = arith.constant 0 : i32
    %c0_i32_1 = arith.constant 0 : i32
    return %c0_i32, %c0_i32_0 : i32, i32
  }
  func.func @transform_3(%arg0: i32) -> (i32, i32) {
    %c0_i32 = arith.constant 0 : i32
    %c0_i32_0 = arith.constant 0 : i32
    %c0_i32_1 = arith.constant 0 : i32
    return %c0_i32, %c0_i32_0 : i32, i32
  }
  func.func @transform_4(%arg0: i32) -> (i32, i32) {
    %c0_i32 = arith.constant 0 : i32
    %c0_i32_0 = arith.constant 0 : i32
    %c0_i32_1 = arith.constant 0 : i32
    return %c0_i32, %c0_i32_0 : i32, i32
  }
  func.func @transform_5(%arg0: i32) -> (i32, i32) {
    %c0_i32 = arith.constant 0 : i32
    %c0_i32_0 = arith.constant 0 : i32
    %c0_i32_1 = arith.constant 0 : i32
    return %c0_i32, %c0_i32_0 : i32, i32
  }
  func.func @transform_6(%arg0: i32) -> (i32, i32) {
    %c0_i32 = arith.constant 0 : i32
    %c0_i32_0 = arith.constant 0 : i32
    %c0_i32_1 = arith.constant 0 : i32
    return %c0_i32, %c0_i32_0 : i32, i32
  }
  func.func @transform_7(%arg0: i32) -> (i32, i32) {
    %c0_i32 = arith.constant 0 : i32
    %c0_i32_0 = arith.constant 0 : i32
    return %c0_i32, %arg0 : i32, i32
  }
}

</mosaic_0001>

<bundles_post_ra>
// kernel: _net_forward_2d.1
= control target key start
LH: loop header
LB: loop body
LE: loop exit
PB: predicated region body
PF: predicated region fallthrough
CT: control target
= control target key end

     0   :  { %vm68_vm0 = vcmask 1043456   ;;  %vm55_vm1 = vcmask 31744   ;;  %v410_v3 = vmov 0   ;;  %vm175_vm2 = vcmask 261120   ;;  %s508_s0 = inlined_call_operand.vmem [shape: f32[4,128], index: 0, kind: input, shape index: {}]   ;;  %s509_s1 = inlined_call_operand.vmem [shape: f32[32,4], index: 1, kind: input, shape index: {}]   ;;  %s510_s2 = inlined_call_operand.vmem [shape: f32[32,1], index: 2, kind: input, shape index: {}]   ;;  %s511_s4 = inlined_call_operand.vmem [shape: f32[16,1], index: 4, kind: input, shape index: {}]   ;;  %s512_s6 = inlined_call_operand.vmem [shape: f32[2,1], index: 6, kind: input, shape index: {}]   ;;  %s513_s3 = inlined_call_operand.vmem [shape: f32[16,32], index: 3, kind: input, shape index: {}]   ;;  %s514_s5 = inlined_call_operand.vmem [shape: f32[2,16], index: 5, kind: input, shape index: {}]   ;;  %s515_s7 = inlined_call_operand.vmem [shape: f32[2,128], index: 7, kind: output, shape index: {}]  }
   0x1   :  { %v26_v0 = vld [vmem:[%s508_s0] sm:$0xf]  ;;  %v28_v2 = vld [vmem:[%s509_s1 + $0x8] sm:$0xff]  ;;  %408 = vset.pattern.permute.xlu0 %v410_v3  ;;  %409 = vset.pattern.permute.xlu1 %v410_v3  ;;  %v29_v4 = vld [vmem:[%s509_s1 + $0x10] sm:$0xff]  ;;  %v411_v33 = vmov 0.0|0.0   ;;  %vm412_vm3 = vmmov 0  }
   0x2   :  { %v27_v1 = vld [vmem:[%s509_s1] sm:$0xff]  ;;  %367 = vmatprep.subr.msk.mxu0 %vm68_vm0, %v26_v0  ;;  %v33_v6 = vld [vmem:[%s510_s2 + $0x10] sm:$0xff]  ;;  %v32_v7 = vld [vmem:[%s510_s2 + $0x8] sm:$0xff]  ;;  %v413_v34 = vmov 0.0   ;;  %vm266_vm4 = vcmask 130048  }
   0x3   :  { %369 = vmatprep.mubr.msk.f32.mxu0 %vm55_vm1, %v27_v1  ;;  %v31_v5 = vld [vmem:[%s510_s2] sm:$0xff]  ;;  %368 = vmatpush3.msk.msra.mxu0 %vm68_vm0, %v26_v0  ;;  %v30_v8 = vld [vmem:[%s509_s1 + $0x18] sm:$0xff]  ;;  %v164_v11 = vld [vmem:[%s511_s4 + $0x8] sm:$0xff] }
   0x4   :  { %37 = vperm.xlu0 %408, %v31_v5   ;;  %370 = vmatmul.mubr.msk.f32.vlgmr.msra.gmra.mrb[0].mxu0 %vm55_vm1, %v28_v2  ;;  %v34_v9 = vld [vmem:[%s510_s2 + $0x18] sm:$0xff]  ;;  %v163_v10 = vld [vmem:[%s511_s4] sm:$0xff]  ;;  %v162_v32 = vld [vmem:[%s513_s3 + $0x8] sm:$0xff] }
   0x5   :  { %47 = vperm.xlu1 %409, %v33_v6   ;;  %372 = vmatprep.mubr.msk.f32.mxu0 %vm55_vm1, %v29_v4  ;;  %v260_v12 = vld [vmem:[%s512_s6] sm:$0x3] }
   0x6   :  { %v161_v13 = vld [vmem:[%s513_s3] sm:$0xff]  ;;  %401 = vmatprep.subr.bf16.mxu0 %v411_v33 }
   0x7   :  { %383 = vmatprep.mubr.msk.f32.mxu1 %vm175_vm2, %v161_v13  ;;  %v259_v44 = vld [vmem:[%s514_s5] sm:$0x3] }
   0x8   :  { %42 = vperm.xlu0 %408, %v32_v7   ;;  %373 = vmatmul.mubr.msk.f32.gmra.mrb[2].mxu0 %vm55_vm1, %v30_v8 }
   0x9   :  { %52 = vperm.xlu1 %409, %v34_v9   ;;  %390 = vmatprep.mubr.msk.f32.mxu0 %vm412_vm3, %v413_v34 }
   0xc   :  { %167 = vperm.xlu0 %408, %v163_v10  }
   0xd   :  { %172 = vperm.xlu1 %409, %v164_v11  }
  0x10   :  { %263 = vperm.xlu0 %408, %v260_v12  }
  0x83   :  { %v38_v14 = vpop.permute.xlu0 %37 }
  0x84   :  { %v48_v15 = vpop.permute.xlu1 %47 }
  0x87   :  { %v43_v16 = vpop.permute.xlu0 %42 }
  0x88   :  { %v53_v22 = vpop.permute.xlu1 %52 }
  0x8b   :  { %v168_v37 = vpop.permute.xlu0 %167 }
  0x8c   :  { %v173_v35 = vpop.permute.xlu1 %172 }
  0x8f   :  { %v264_v45 = vpop.permute.xlu0 %263 }
  0xd7   :  { %v371_v17 = vpop.f32.mrb[0].mxu0 }
  0xd8   :  { %v144_v18 = vadd.f32 %v371_v17, %v43_v16  ;;  %v138_v19 = vpop.f32.mrb[1].mxu0 }
  0xd9   :  { %v139_v20 = vadd.f32 %v138_v19, %v38_v14 }
  0xda   :  { %v158_v21 = vmax.f32 %v144_v18, 0.0 }
  0xdb   :  { %v157_v23 = vmax.f32 %v139_v20, 0.0  ;;  %v374_v24 = vpop.f32.mrb[2].mxu0 }
  0xdc   :  { %v154_v25 = vadd.f32 %v374_v24, %v53_v22  ;;  %v148_v26 = vpop.f32.mrb[3].mxu0 }
  0xdd   :  { %v149_v27 = vadd.f32 %v148_v26, %v48_v15  ;;  %v393_v28 = vpack.c.bf16 %v158_v21, %v157_v23 }
  0xde   :  { %v160_v29 = vmax.f32 %v154_v25, 0.0 }
  0xdf   :  { %v159_v30 = vmax.f32 %v149_v27, 0.0  ;;  %394 = vmatprep.subr.bf16.mxu1 %v393_v28 }
  0xe0   :  { %396 = vmatpush3.bf16.msra.mxu1 %v393_v28 }
  0xe1   :  { %v397_v31 = vpack.c.bf16 %v160_v29, %v159_v30 }
  0xe3   :  { %398 = vmatprep.subr.bf16.mxu1 %v397_v31 }
  0xe4   :  { %400 = vmatpush3.bf16.msra.mxu1 %v397_v31 }
  0xe7   :  { %384 = vmatmul.mubr.msk.f32.vlgmr.msra.gmra.mrb[0].mxu1 %vm175_vm2, %v162_v32 }
 0x1ba   :  { %v385_v36 = vpop.f32.mrb[0].mxu1 }
 0x1bb   :  { %v254_v38 = vadd.f32 %v385_v36, %v173_v35  ;;  %v248_v39 = vpop.f32.mrb[1].mxu1 }
 0x1bc   :  { %v249_v40 = vadd.f32 %v248_v39, %v168_v37 }
 0x1bd   :  { %v258_v41 = vmax.f32 %v254_v38, 0.0 }
 0x1be   :  { %v257_v42 = vmax.f32 %v249_v40, 0.0 }
 0x1c0   :  { %v402_v43 = vpack.c.bf16 %v258_v41, %v257_v42 }
 0x1c2   :  { %403 = vmatpush3.bf16.msra.mxu0 %v402_v43 }
 0x1c5   :  { %391 = vmatmul.mubr.msk.f32.vlgmr.msra.gmra.mrb[4].mxu0 %vm266_vm4, %v259_v44 }
 0x298   :  { %v336_v46 = vpop.f32.mrb[4].mxu0 }
 0x299   :  { %v337_v47 = vadd.f32 %v336_v46, %v264_v45  ;;  %v392_v48 = vpop.f32.mrb[5].mxu0 }
 0x29b   :  { %340 = vst [vmem:[%s515_s7] sm:$0x3] %v337_v47 }

</bundles_post_ra>
